<compile_context>
chip_gen: v7x
topology: tpu7x:2x2x1
jax: 0.10.0
libtpu: 0.0.40
codegen_flags: <defaults>
</compile_context>

<pallas_src>
import jax
import jax.numpy as jnp
from jax import lax
from jax.experimental import pallas as pl
from jax.experimental.pallas import tpu as pltpu

BN_EPS = 1e-5
_LANE = 128
_VMEM_BUDGET = 24 * 1024 * 1024   # target working set (double-buffered blocks)
_VMEM_LIMIT = 32 * 1024 * 1024    # raise v5e's 16 MiB default; safe on v7x


def _round_up(x, m):
    return (x + m - 1) // m * m


def _apply_kernel(x_ref, w_ref, scale_ref, shift_ref, a_ref, o_ref):
    # Contraction on the MXU (otherwise idle); VALU/XLU stay free for epilogue.
    h = jnp.dot(x_ref[...], w_ref[...], preferred_element_type=jnp.float32)
    y = h * scale_ref[...] + shift_ref[...]        # folded BN: one FMA / elem
    a = a_ref[0, 0]                                # shared PReLU slope (SMEM)
    o_ref[...] = jnp.where(y > 0, y, a * y).astype(o_ref.dtype)


def _choose_tile(n_rows, row_tile, per_row_bytes):
    """Row tile: big enough to amortize ~0.35us/step overhead, small enough to
    keep double-buffered blocks in the VMEM budget, and >= 2 grid steps when
    there is enough work so v7x's two TensorCores both run."""
    if n_rows <= 8:
        return n_rows                              # single full block is legal
    max_tile = max(8, (_VMEM_BUDGET // per_row_bytes) // 8 * 8)
    tile = max(8, (min(row_tile, max_tile) // 8) * 8)
    half = _round_up((n_rows + 1) // 2, 8)
    return min(tile, half)


def action_in_forward(action, w, b, gamma, beta, prelu_a, *, row_tile=8192):
    """Pallas implementation of Action_IN.forward.

    action: (episodes, steps, action_shape) or (episodes, action_shape)
    w:      (action_shape, encode_action_size)
    b, gamma, beta: (encode_action_size,)
    prelu_a: scalar (PReLU with num_parameters=1)
    """
    # Bias cancels exactly under training-mode BatchNorm mean subtraction
    # (mean(h+b) = mean(h)+b).  If eval-mode BN (running stats) is ever used,
    # the bias must be restored.
    del b

    if action.ndim == 2:
        action = action[:, None, :]
    episodes, steps, a_dim = action.shape
    n = episodes * steps
    encode = w.shape[1]

    x2d = action.reshape(n, a_dim).astype(jnp.float32)
    w2d = w.astype(jnp.float32)
    gamma = gamma.reshape(1, encode).astype(jnp.float32)
    beta = beta.reshape(1, encode).astype(jnp.float32)
    a2d = jnp.asarray(prelu_a, jnp.float32).reshape(1, 1)

    # ---- Batch statistics via tiny centered Gram reduction (plain XLA). ----
    mean_x = jnp.mean(x2d, axis=0, keepdims=True)             # (1, K)
    xc = x2d - mean_x
    cov = xc.T @ xc                                            # (K, K)
    mean_h = mean_x @ w2d                                      # (1, E) bias-free
    var_h = jnp.maximum(
        jnp.sum((cov @ w2d) * w2d, axis=0, keepdims=True) / float(n), 0.0)
    scale = gamma * lax.rsqrt(var_h + BN_EPS)                  # (1, E)
    shift = beta - mean_h * scale                              # (1, E)

    # ---- Lane-dense folding: pack g rows into the lane dimension. ----
    if encode < _LANE and _LANE % encode == 0 and n % (_LANE // encode) == 0:
        g = _LANE // encode
    else:
        g = 1

    k_pad = _round_up(a_dim, 8)
    x_pad = x2d if k_pad == a_dim else jnp.pad(x2d, ((0, 0), (0, k_pad - a_dim)))
    w_pad = w2d if k_pad == a_dim else jnp.pad(w2d, ((0, k_pad - a_dim), (0, 0)))

    n_f = n // g
    kf = g * k_pad
    ef = g * encode
    x_f = x_pad.reshape(n_f, kf)                  # contiguous reshape -> free
    if g > 1:
        eye = jnp.eye(g, dtype=jnp.float32)
        w_f = jnp.einsum('ij,ke->ikje', eye, w_pad).reshape(kf, ef)
        scale_f = jnp.tile(scale, (1, g))
        shift_f = jnp.tile(shift, (1, g))
    else:
        w_f, scale_f, shift_f = w_pad, scale, shift

    # Lane-padded, double-buffered per-row VMEM footprint (x block + out block).
    per_row = 2 * 4 * (_round_up(kf, _LANE) + _round_up(ef, _LANE))
    tile = _choose_tile(n_f, row_tile, per_row)
    num_tiles = pl.cdiv(n_f, tile)

    out = pl.pallas_call(
        _apply_kernel,
        out_shape=jax.ShapeDtypeStruct((n_f, ef), jnp.float32),
        grid=(num_tiles,),
        in_specs=[
            pl.BlockSpec((tile, kf), lambda i: (i, 0)),
            pl.BlockSpec((kf, ef), lambda i: (0, 0)),
            pl.BlockSpec((1, ef), lambda i: (0, 0)),
            pl.BlockSpec((1, ef), lambda i: (0, 0)),
            pl.BlockSpec((1, 1), lambda i: (0, 0), memory_space=pltpu.SMEM),
        ],
        out_specs=pl.BlockSpec((tile, ef), lambda i: (i, 0)),
        compiler_params=pltpu.CompilerParams(
            dimension_semantics=("parallel",),
            vmem_limit_bytes=_VMEM_LIMIT),
    )(x_f, w_f, scale_f, shift_f, a2d)

    # (n_f, g*E) and (n, E) share the same row-major layout: reshape is free.
    return out.reshape(episodes, steps, encode)


def _reference(action, w, b, gamma, beta, prelu_a):
    if action.ndim == 2:
        action = action[:, None, :]
    e, s, a_dim = action.shape
    x = action.reshape(e * s, a_dim).astype(jnp.float32)
    h = x @ w + b
    mean = jnp.mean(h, axis=0, keepdims=True)
    var = jnp.mean((h - mean) ** 2, axis=0, keepdims=True)
    y = gamma * (h - mean) / jnp.sqrt(var + BN_EPS) + beta
    y = jnp.where(y > 0, y, prelu_a * y)
    return y.reshape(e, s, -1)


if __name__ == "__main__":
    # Small shapes consistent with the module's forward.
    episodes, steps = 2, 8
    action_shape = 4
    encode_action_size = 32

    key = jax.random.PRNGKey(0)
    k_x, k_w, k_b, k_g, k_be = jax.random.split(key, 5)

    action = jax.random.normal(k_x, (episodes, steps, action_shape), jnp.float32)

    # Deterministic synthetic params (shapes from Linear/BatchNorm1d/PReLU).
    w = jax.random.normal(k_w, (action_shape, encode_action_size), jnp.float32) * 0.1
    b = jax.random.normal(k_b, (encode_action_size,), jnp.float32) * 0.1
    gamma = 1.0 + 0.1 * jax.random.normal(k_g, (encode_action_size,), jnp.float32)
    beta = 0.1 * jax.random.normal(k_be, (encode_action_size,), jnp.float32)
    prelu_a = jnp.float32(0.25)  # PyTorch PReLU default init

    out = action_in_forward(action, w, b, gamma, beta, prelu_a)
    out = jax.block_until_ready(out)

    ref = _reference(action, w, b, gamma, beta, prelu_a)
    assert out.shape == (episodes, steps, encode_action_size)
    assert jnp.allclose(out, ref, atol=1e-4, rtol=1e-4), "mismatch vs reference"

    print("KERNEL_OK")
</pallas_src>

<mosaic_0001>
module attributes {stable_mosaic.version = 11 : i64} {
  func.func @_apply_kernel(%arg0: i32, %arg1: memref<4x32xf32, #tpu.memory_space<vmem>>, %arg2: memref<32x128xf32, #tpu.memory_space<vmem>>, %arg3: memref<1x128xf32, #tpu.memory_space<vmem>>, %arg4: memref<1x128xf32, #tpu.memory_space<vmem>>, %arg5: memref<1x1xf32, #tpu.memory_space<smem>>, %arg6: memref<4x128xf32, #tpu.memory_space<vmem>>) attributes {dimension_semantics = [#tpu.dimension_semantics<parallel>], iteration_bounds = array<i64: 1>, scalar_prefetch = 0 : i64, scratch_operands = 0 : i64, tpu.core_type = #tpu.core_type<tc>, window_params = [{transform_indices = @transform_0, window_bounds = array<i64: 4, 32>}, {pipeline_mode = #tpu.pipeline_mode<synchronous>, transform_indices = @transform_1, window_bounds = array<i64: 32, 128>}, {pipeline_mode = #tpu.pipeline_mode<synchronous>, transform_indices = @transform_2, window_bounds = array<i64: 1, 128>}, {pipeline_mode = #tpu.pipeline_mode<synchronous>, transform_indices = @transform_3, window_bounds = array<i64: 1, 128>}, {transform_indices = @transform_4, window_bounds = array<i64: 1, 1>}, {transform_indices = @transform_5, window_bounds = array<i64: 4, 128>}]} {
    %c0 = arith.constant 0 : index
    %c0_0 = arith.constant 0 : index
    %0 = vector.load %arg1[%c0, %c0_0] : memref<4x32xf32, #tpu.memory_space<vmem>>, vector<4x32xf32>
    %c0_1 = arith.constant 0 : index
    %c0_2 = arith.constant 0 : index
    %1 = vector.load %arg2[%c0_1, %c0_2] : memref<32x128xf32, #tpu.memory_space<vmem>>, vector<32x128xf32>
    %cst = arith.constant dense<0.000000e+00> : vector<4x128xf32>
    %2 = tpu.matmul %0, %1, %cst {dimension_numbers = #tpu.dot_dimension_numbers<[1], [0], [0], [1], [0, 0, 1, 1], [], []>} : vector<4x32xf32>, vector<32x128xf32>, vector<4x128xf32> -> vector<4x128xf32>
    %c0_3 = arith.constant 0 : index
    %c0_4 = arith.constant 0 : index
    %3 = vector.load %arg3[%c0_3, %c0_4] : memref<1x128xf32, #tpu.memory_space<vmem>>, vector<1x128xf32>
    %4 = vector.broadcast %3 : vector<1x128xf32> to vector<4x128xf32>
    %5 = arith.mulf %2, %4 : vector<4x128xf32>
    %c0_5 = arith.constant 0 : index
    %c0_6 = arith.constant 0 : index
    %6 = vector.load %arg4[%c0_5, %c0_6] : memref<1x128xf32, #tpu.memory_space<vmem>>, vector<1x128xf32>
    %7 = vector.broadcast %6 : vector<1x128xf32> to vector<4x128xf32>
    %8 = arith.addf %5, %7 : vector<4x128xf32>
    %c0_7 = arith.constant 0 : index
    %c0_8 = arith.constant 0 : index
    %9 = memref.load %arg5[%c0_7, %c0_8] : memref<1x1xf32, #tpu.memory_space<smem>>
    %cst_9 = arith.constant 0.000000e+00 : f32
    %10 = vector.broadcast %cst_9 : f32 to vector<4x128xf32>
    %11 = arith.cmpf ogt, %8, %10 : vector<4x128xf32>
    %12 = vector.broadcast %9 : f32 to vector<4x128xf32>
    %13 = arith.mulf %12, %8 : vector<4x128xf32>
    %14 = arith.select %11, %8, %13 : vector<4x128xi1>, vector<4x128xf32>
    %c0_10 = arith.constant 0 : index
    %c0_11 = arith.constant 0 : index
    %15 = vector.load %arg6[%c0_10, %c0_11] : memref<4x128xf32, #tpu.memory_space<vmem>>, vector<4x128xf32>
    tpu.vector_store %arg6[%c0_10, %c0_11], %14 {strides = array<i32>} : memref<4x128xf32, #tpu.memory_space<vmem>>, vector<4x128xf32>,
    return
  }
  func.func @transform_0(%arg0: i32) -> (i32, i32) {
    %c0_i32 = arith.constant 0 : i32
    %c0_i32_0 = arith.constant 0 : i32
    return %arg0, %c0_i32 : i32, i32
  }
  func.func @transform_1(%arg0: i32) -> (i32, i32) {
    %c0_i32 = arith.constant 0 : i32
    %c0_i32_0 = arith.constant 0 : i32
    %c0_i32_1 = arith.constant 0 : i32
    return %c0_i32, %c0_i32_0 : i32, i32
  }
  func.func @transform_2(%arg0: i32) -> (i32, i32) {
    %c0_i32 = arith.constant 0 : i32
    %c0_i32_0 = arith.constant 0 : i32
    %c0_i32_1 = arith.constant 0 : i32
    return %c0_i32, %c0_i32_0 : i32, i32
  }
  func.func @transform_3(%arg0: i32) -> (i32, i32) {
    %c0_i32 = arith.constant 0 : i32
    %c0_i32_0 = arith.constant 0 : i32
    %c0_i32_1 = arith.constant 0 : i32
    return %c0_i32, %c0_i32_0 : i32, i32
  }
  func.func @transform_4(%arg0: i32) -> (i32, i32) {
    %c0_i32 = arith.constant 0 : i32
    %c0_i32_0 = arith.constant 0 : i32
    %c0_i32_1 = arith.constant 0 : i32
    return %c0_i32, %c0_i32_0 : i32, i32
  }
  func.func @transform_5(%arg0: i32) -> (i32, i32) {
    %c0_i32 = arith.constant 0 : i32
    %c0_i32_0 = arith.constant 0 : i32
    return %arg0, %c0_i32 : i32, i32
  }
}

</mosaic_0001>

<bundles_post_ra>
// kernel: tpu_custom_call.1
= control target key start
LH: loop header
LB: loop body
LE: loop exit
PB: predicated region body
PF: predicated region fallthrough
CT: control target
= control target key end

     0   :  { %11 = vsyncpa [#allocation4], 0  ;;  %s360_s0 = inlined_call_operand.hbm [shape: f32[4,32], index: 0, kind: input, shape index: {}]   ;;  %s361_s1 = inlined_call_operand.hbm [shape: f32[32,128], index: 1, kind: input, shape index: {}]   ;;  %s362_s2 = inlined_call_operand.vmem [shape: f32[1,128], index: 2, kind: input, shape index: {}]   ;;  %s363_s3 = inlined_call_operand.vmem [shape: f32[1,128], index: 3, kind: input, shape index: {}]   ;;  %s364_s4 = inlined_call_operand.<no memory space> [shape: f32[1,1], index: 4, kind: input, shape index: {}]   ;;  %s365_s5 = inlined_call_operand.hbm [shape: f32[4,128], index: 5, kind: output, shape index: {}]  }
   0x1   :  { %12 = vsyncpa [#allocation7], 0 }
   0x2   :  { %13 = vsyncpa [#allocation5], 0  ;;  %s270_s18 = smov [#allocation3]   ;;  %s271_s20 = smov [#allocation6]  }
   0x3   :  { %s20_s19 = sshll.u32 %s270_s18, 4  ;;  %s29_s21 = sshll.u32 %s271_s20, 4  ;;  %s21_s19 = int_to_ptr.vmem [resolvable:$true] %s20_s19  ;;  %s308_s21 = int_to_ptr.vmem [resolvable:$true] %s29_s21 }
   0x4   :  { %s198_s24 = scalar_lea.hbm %s360_s0, 64 }
   0x5   :  { %p199_p0 = scmp.ne.s32.totalorder %s360_s0, %s198_s24  ;;  %p202_p1 = scmp.lt.u32.totalorder %s198_s24, %s360_s0 }
   0x7   :  { %p204_p2 = pnand %p202_p1, %p199_p0 }
   0x9   :  { %207 = shalt.err (!%p204_p2)
}
   0xa   :  { %s208_s29 = scalar_lea.vmem %s21_s19, 64  ;;  %p213_p4 = scmp.lt.s32.totalorder %s21_s19, %s21_s19 }
   0xb   :  { %p209_p3 = scmp.ne.s32.totalorder %s21_s19, %s208_s29  ;;  %p214_p5 = scmp.lt.s32.totalorder %s208_s29, %s208_s29 }
   0xd   :  { %p215_p6 = por %p214_p5, %p213_p4 }
   0xf   :  { %p216_p7 = pnand %p215_p6, %p209_p3 }
  0x11   :  { %219 = shalt.err (!%p216_p7)
}
  0x12   :  { %23 = dma.hbm_to_vmem [thread:$0]  %s360_s0, 64, %s21_s19, [#allocation4]  }
  0x13   :  { %s220_s9 = scalar_lea.hbm %s361_s1, 512 }
  0x14   :  { %p221_p8 = scmp.ne.s32.totalorder %s361_s1, %s220_s9  ;;  %p224_p9 = scmp.lt.u32.totalorder %s220_s9, %s361_s1 }
  0x16   :  { %p226_p10 = pnand %p224_p9, %p221_p8 }
  0x18   :  { %229 = shalt.err (!%p226_p10)
}
  0x19   :  { %s230_s14 = scalar_lea.vmem %s308_s21, 512  ;;  %p235_p12 = scmp.lt.s32.totalorder %s308_s21, %s308_s21 }
  0x1a   :  { %p231_p11 = scmp.ne.s32.totalorder %s308_s21, %s230_s14  ;;  %p236_p13 = scmp.lt.s32.totalorder %s230_s14, %s230_s14 }
  0x1c   :  { %p237_p0 = por %p236_p13, %p235_p12 }
  0x1e   :  { %p238_p1 = pnand %p237_p0, %p231_p11 }
  0x20   :  { %241 = shalt.err (!%p238_p1)
}
  0x21   :  { %s272_s0 = smov 128   ;;  %s273_s15 = smov 8  }
  0x22   :  { %35 = dma.hbm_to_vmem [thread:$0]  %s361_s1, 512, %s308_s21, [#allocation7], %s272_s0, %s272_s0, %s273_s15  }
  0x23   :  { %264 = dma.done.wait [#allocation4], 64  }
  0x24   :  { %265 = vsyncadd [#allocation4], 4294967232 }
  0x25   :  { %266 = dma.done.wait [#allocation7], 512  }
  0x26   :  { %267 = vsyncadd [#allocation7], 4294966784  ;;  %v274_v0 = vmov 0.0|0.0   ;;  %vm275_vm0 = vmmov 0   ;;  %v276_v1 = vmov 0.0   ;;  %v49_v2 = vld [vmem:[#allocation6] sm:$0xff]  ;;  %v145_v14 = vstv %s364_s4 }
  0x27   :  { %184 = vmatprep.subr.bf16.mxu0 %v274_v0  ;;  %181 = vmatprep.mubr.msk.f32.mxu0 %vm275_vm0, %v276_v1  ;;  %v50_v3 = vld [vmem:[#allocation6 + $0x8] sm:$0xff]  ;;  %v51_v4 = vld [vmem:[#allocation6 + $0x10] sm:$0xff]  ;;  %v52_v6 = vld [vmem:[#allocation6 + $0x18] sm:$0xff]  ;;  %vm53_vm1 = vcmask 261120   ;;  %s277_s23 = smov [#allocation8]  }
  0x28   :  { %v185_v5 = vpack.c.bf16 %v50_v3, %v49_v2  ;;  %v188_v7 = vpack.c.bf16 %v52_v6, %v51_v4  ;;  %v48_v8 = vld [vmem:[#allocation3] sm:$0xf]  ;;  %s155_s24 = sshll.u32 %s277_s23, 4  ;;  %s156_s24 = int_to_ptr.vmem [resolvable:$true] %s155_s24 }
  0x29   :  { %v166_v9 = vld [vmem:[%s362_s2] ss:$0 sm:$0xff]  ;;  %s242_s2 = scalar_lea.vmem %s156_s24, 64  ;;  %p247_p3 = scmp.lt.s32.totalorder %s156_s24, %s156_s24 }
  0x2a   :  { %186 = vmatpush3.bf16.msra.mxu0 %v185_v5  ;;  %v167_v11 = vld [vmem:[%s363_s3] ss:$0 sm:$0xff]  ;;  %p243_p2 = scmp.ne.s32.totalorder %s156_s24, %s242_s2  ;;  %p248_p4 = scmp.lt.s32.totalorder %s242_s2, %s242_s2 }
  0x2b   :  { %187 = vmatprep.subr.bf16.mxu0 %v274_v0 }
  0x2c   :  { %p249_p5 = por %p248_p4, %p247_p3 }
  0x2e   :  { %189 = vmatpush3.bf16.msra.mxu0 %v188_v7  ;;  %p250_p6 = pnand %p249_p5, %p243_p2 }
  0x31   :  { %182 = vmatmul.mubr.msk.f32.vlgmr.msra.gmra.mrb[0].mxu0 %vm53_vm1, %v48_v8 }
 0x104   :  { %v123_v10 = vpop.f32.mrb[0].mxu0 }
 0x105   :  { %v134_v12 = vmul.f32 %v166_v9, %v123_v10  ;;  %v183_v13 = vpop.f32.mrb[1].mxu0 }
 0x107   :  { %v142_v15 = vadd.f32 %v167_v11, %v134_v12 }
 0x109   :  { %v146_v16 = vmul.f32 %v145_v14, %v142_v15  ;;  %vm144_vm2 = vcmp.gt.f32.partialorder %v142_v15, 0.0 }
 0x10b   :  { %v147_v17 = vsel %vm144_vm2, %v142_v15, %v146_v16 }
 0x10c   :  { %148 = vst [vmem:[#allocation8] sm:$0xf] %v147_v17 }
 0x10d   :  { %253 = shalt.err (!%p250_p6)
}
 0x10e   :  { %s254_s26 = scalar_lea.hbm %s365_s5, 64 }
 0x10f   :  { %p255_p7 = scmp.ne.s32.totalorder %s365_s5, %s254_s26  ;;  %p258_p8 = scmp.lt.u32.totalorder %s254_s26, %s365_s5 }
 0x111   :  { %p260_p9 = pnand %p258_p8, %p255_p7 }
 0x113   :  { %263 = shalt.err (!%p260_p9)
}
 0x114   :  { %158 = dma.vmem_to_hbm [thread:$0]  %s156_s24, 64, %s365_s5, [#allocation5]  }
 0x115   :  { %268 = dma.done.wait [#allocation5], 64  }
 0x116   :  { %269 = vsyncadd [#allocation5], 4294967232 }
 0x117   :  { %162 = vsyncpa [#allocation4], 1 }
 0x118   :  { %163 = vsyncpa [#allocation7], 1 }
 0x119   :  { %164 = vsyncpa [#allocation5], 1 }

</bundles_post_ra>
